<compile_context>
chip_gen: v6e
topology: v6e:2x2x1
jax: 0.10.0
libtpu: 0.0.40
codegen_flags: <defaults>
</compile_context>

<pallas_src>
import functools
import math

import jax
import jax.numpy as jnp
from jax import lax
from jax.experimental import pallas as pl
from jax.experimental.pallas import tpu as pltpu


# ------------------------- Fused decoder kernel ----------------------------- #

def _decoder_kernel(s1_ref, pos_h1_ref, w2_ref, b2_ref, w3_ref, b3_ref,
                    w4_ref, b4_ref, recon_ref, masks_ref):
    k_slots = s1_ref.shape[1]
    tp, hidden = pos_h1_ref.shape
    dout = recon_ref.shape[-1]
    mxu_dtype = w2_ref.dtype            # bf16 by default -> high-rate MXU path

    # Layer 1 with the pos-embed add folded in:
    #   relu((slot+pos)@W1 + b1) == relu(s1 + pos_h1), s1 precomputed (K, H).
    s1 = s1_ref[0]                                                    # (K, H) f32
    h = jnp.maximum(s1[:, None, :] + pos_h1_ref[...][None, :, :], 0.0)
    h = h.reshape(k_slots * tp, hidden)                               # (K*tp, H)

    h = jnp.maximum(
        jnp.dot(h.astype(mxu_dtype), w2_ref[...],
                preferred_element_type=jnp.float32)
        + b2_ref[...].astype(jnp.float32), 0.0)
    h = jnp.maximum(
        jnp.dot(h.astype(mxu_dtype), w3_ref[...],
                preferred_element_type=jnp.float32)
        + b3_ref[...].astype(jnp.float32), 0.0)
    y = (jnp.dot(h.astype(mxu_dtype), w4_ref[...],
                 preferred_element_type=jnp.float32)
         + b4_ref[...].astype(jnp.float32))                           # (K*tp, Dout+1)
    y = y.reshape(k_slots, tp, dout + 1)

    # Fused combine: softmax over the slot axis + alpha-weighted reduction.
    dec = y[..., :dout]                                               # (K, tp, Dout)
    logits = y[..., dout:]              # keepdims slice: stays lane-1 layout
    m = jnp.max(logits, axis=0, keepdims=True)
    e = jnp.exp(logits - m)
    alpha = e * pl.reciprocal(jnp.sum(e, axis=0, keepdims=True), approx=True)
    masks_ref[0] = alpha[..., 0].astype(masks_ref.dtype)              # one relayout
    recon_ref[0] = jnp.sum(dec * alpha, axis=0).astype(recon_ref.dtype)


# ------------------------------ Budget helpers ------------------------------ #

def _vmem_capacity_bytes():
    """Per-core VMEM capacity (generation-aware); conservative fallback."""
    try:
        cap = getattr(pltpu.get_tpu_info(), "vmem_capacity_bytes", None)
        if cap:
            return int(cap)
    except Exception:
        pass
    return 64 * 2**20   # v7x per-TC VMEM -- safe on every generation


def _pick_patch_tile(num_patches, k_slots, hidden, dout1, act_budget_bytes):
    """Return (tp, padded_num_patches).  Non-full tiles are multiples of 128 so
    every BlockSpec obeys the (8, 128) layout rule; if num_patches has no
    suitable divisor, it is padded (patch rows are independent)."""
    per_patch = 4 * k_slots * max(hidden, dout1) * 4      # ~4 live f32 buffers
    if per_patch * num_patches <= act_budget_bytes:
        return num_patches, num_patches
    tp_budget = max(128, (act_budget_bytes // per_patch) // 128 * 128)
    if num_patches >= 128:
        tp_budget = min(tp_budget, (num_patches // 128) * 128)
    # Prefer an exact 128-multiple divisor (no padding) if it is not too small.
    for cand in range(tp_budget, 127, -128):
        if num_patches % cand == 0:
            if cand * 2 >= tp_budget:
                return cand, num_patches
            break
    padded = -(-num_patches // tp_budget) * tp_budget
    return tp_budget, padded


# ------------------------------ pallas_call wrapper -------------------------- #

def _decode_combined(s1, pos_h1, w2, b2, w3, b3, w4, b4, *,
                     num_patches, output_dim, out_dtype):
    lead, k_slots, hidden = s1.shape
    dout1 = output_dim + 1

    capacity = _vmem_capacity_bytes()
    act_budget = capacity // 4
    tp, p_pad = _pick_patch_tile(num_patches, k_slots, hidden, dout1, act_budget)

    # v7x megacore: keep >=2 grid programs when a single full-extent tile would
    # otherwise leave one TensorCore idle.
    if lead == 1 and p_pad // tp < 2 and tp % 256 == 0:
        tp //= 2

    if p_pad != num_patches:
        pos_h1 = jnp.pad(pos_h1, ((0, p_pad - num_patches), (0, 0)))

    wsize = jnp.dtype(w2.dtype).itemsize
    osize = jnp.dtype(out_dtype).itemsize
    weight_bytes = (2 * hidden * hidden + hidden * dout1
                    + 2 * hidden + dout1) * wsize            # single-buffered
    stream_bytes = 2 * (k_slots * hidden * 4 + tp * hidden * 4
                        + tp * output_dim * osize + k_slots * tp * osize)
    act_bytes = 4 * k_slots * tp * max(hidden, dout1) * 4
    est = weight_bytes + stream_bytes + act_bytes
    headroom = capacity - capacity // 8          # leave ~12.5% compiler scratch
    vmem_limit = int(min(headroom, max(32 * 2**20, int(1.5 * est))))

    buffered1 = pl.Buffered(1) if hasattr(pl, "Buffered") else None

    def const2d(shape):
        # Resident weights/biases: constant block index -> fetched once; single
        # buffered so they do not double their VMEM footprint.
        kw = {"pipeline_mode": buffered1} if buffered1 is not None else {}
        return pl.BlockSpec(shape, lambda p, b: (0, 0), **kw)

    recon, masks = pl.pallas_call(
        _decoder_kernel,
        out_shape=(
            jax.ShapeDtypeStruct((lead, p_pad, output_dim), out_dtype),
            jax.ShapeDtypeStruct((lead, k_slots, p_pad), out_dtype),
        ),
        grid_spec=pltpu.PrefetchScalarGridSpec(
            num_scalar_prefetch=0,
            # Patch-tile outer, lead inner: pos_h1 stays resident across the
            # inner loop (its block index only changes with p).
            grid=(p_pad // tp, lead),
            in_specs=[
                pl.BlockSpec((1, k_slots, hidden), lambda p, b: (b, 0, 0)),  # s1
                pl.BlockSpec((tp, hidden), lambda p, b: (p, 0)),             # pos@W1+b1
                const2d((hidden, hidden)), const2d((1, hidden)),             # w2, b2
                const2d((hidden, hidden)), const2d((1, hidden)),             # w3, b3
                const2d((hidden, dout1)), const2d((1, dout1)),               # w4, b4
            ],
            out_specs=(
                pl.BlockSpec((1, tp, output_dim), lambda p, b: (b, p, 0)),
                pl.BlockSpec((1, k_slots, tp), lambda p, b: (b, 0, p)),
            ),
        ),
        compiler_params=pltpu.CompilerParams(
            dimension_semantics=("parallel", "parallel"),
            vmem_limit_bytes=vmem_limit),
    )(s1, pos_h1, w2, b2, w3, b3, w4, b4)

    if p_pad != num_patches:
        recon = recon[:, :num_patches]
        masks = masks[:, :, :num_patches]
    return recon, masks


# --------------------------- Module-level forward --------------------------- #

def init_mlp_decoder_params(key, object_dim, output_dim, num_patches,
                            hidden_features, dtype=jnp.float32):
    ks = jax.random.split(key, 5)
    pos_embed = (0.02 * jax.random.normal(
        ks[0], (1, num_patches, object_dim), jnp.float32)).astype(dtype)

    def linear(k, din, dout):
        scale = 1.0 / jnp.sqrt(jnp.float32(din))
        w = jax.random.uniform(k, (din, dout), jnp.float32, -scale, scale)
        b = jnp.zeros((1, dout), jnp.float32)   # nn.init.zeros_ on every bias
        return w.astype(dtype), b.astype(dtype)

    layers = [
        linear(ks[1], object_dim, hidden_features),
        linear(ks[2], hidden_features, hidden_features),
        linear(ks[3], hidden_features, hidden_features),
        linear(ks[4], hidden_features, output_dim + 1),
    ]
    return pos_embed, layers


@functools.partial(jax.jit,
                   static_argnames=("output_dim", "num_patches", "use_bf16_mxu"))
def mlp_decoder_forward(encoder_output, pos_embed, layers, *, output_dim,
                        num_patches, use_bf16_mxu=True):
    """encoder_output: (*initial_shape, object_dim); initial_shape[-1] is the
    object/slot axis (the softmax axis). Returns (reconstruction, masks)."""
    initial_shape = encoder_output.shape[:-1]
    object_dim = encoder_output.shape[-1]
    k_slots = initial_shape[-1]
    lead = math.prod(initial_shape[:-1])

    (w1, b1), (w2, b2), (w3, b3), (w4, b4) = layers
    slots = encoder_output.reshape(lead, k_slots, object_dim)

    f32 = jnp.float32
    # Fold the pos-embed add into layer 1 and hoist the tiny slot@W1 matmul:
    #   relu((slot+pos)@W1 + b1) == relu(slot@W1 + (pos@W1 + b1))
    pos_h1 = (jnp.dot(pos_embed[0].astype(f32), w1.astype(f32),
                      precision=lax.Precision.HIGHEST)
              + b1.astype(f32))                                   # (P, H) f32
    s1 = jnp.dot(slots.astype(f32), w1.astype(f32),
                 precision=lax.Precision.HIGHEST)                 # (lead, K, H)

    if use_bf16_mxu and w2.dtype == jnp.float32:
        # bf16 MXU inputs (2x rate on v6e/v7x, half the weight DMA bytes) with
        # f32 accumulation; elementwise/softmax stays f32 (v5e-safe).
        w2m, w3m, w4m = (w.astype(jnp.bfloat16) for w in (w2, w3, w4))
    else:
        w2m, w3m, w4m = w2, w3, w4

    recon, masks = _decode_combined(
        s1, pos_h1, w2m, b2, w3m, b3, w4m, b4,
        num_patches=num_patches, output_dim=output_dim,
        out_dtype=encoder_output.dtype)

    recon = recon.reshape(*initial_shape[:-1], num_patches, output_dim)
    masks = masks.reshape(*initial_shape, num_patches)
    return recon, masks


# Pure-JAX reference (matches the PyTorch module semantics).
def _reference(encoder_output, pos_embed, layers, output_dim, num_patches):
    initial_shape = encoder_output.shape[:-1]
    d = encoder_output.shape[-1]
    x = (encoder_output.reshape(-1, d)[:, None, :].astype(jnp.float32)
         + pos_embed.astype(jnp.float32))
    for i, (w, b) in enumerate(layers):
        x = jnp.dot(x, w.astype(jnp.float32),
                    precision=lax.Precision.HIGHEST) + b.astype(jnp.float32)
        if i < len(layers) - 1:
            x = jnp.maximum(x, 0.0)
    x = x.reshape(*initial_shape, num_patches, output_dim + 1)
    dec, alpha = x[..., :output_dim], x[..., output_dim:]
    alpha = jax.nn.softmax(alpha, axis=-3)
    recon = jnp.sum(dec * alpha, axis=-3)
    return recon, jnp.squeeze(alpha, -1)


if __name__ == "__main__":
    B, K = 2, 4                 # batch, object slots -> initial_shape = (B, K)
    object_dim = 32
    output_dim = 31             # decoder emits output_dim + 1 per patch
    num_patches = 8
    hidden_features = 128

    key = jax.random.PRNGKey(0)
    kp, kx = jax.random.split(key)
    pos_embed, layers = init_mlp_decoder_params(
        kp, object_dim, output_dim, num_patches, hidden_features)
    encoder_output = jax.random.normal(kx, (B, K, object_dim), jnp.float32)

    r_ref, m_ref = _reference(encoder_output, pos_embed, layers,
                              output_dim, num_patches)
    scale = float(jnp.max(jnp.abs(r_ref))) + 1.0

    # 1) Exact-f32 MXU path (tight tolerance against HIGHEST-precision ref).
    recon, masks = mlp_decoder_forward(
        encoder_output, pos_embed, layers,
        output_dim=output_dim, num_patches=num_patches, use_bf16_mxu=False)
    jax.block_until_ready((recon, masks))
    assert recon.shape == (B, num_patches, output_dim), recon.shape
    assert masks.shape == (B, K, num_patches), masks.shape
    assert jnp.allclose(recon, r_ref, atol=2e-3, rtol=2e-3), \
        float(jnp.max(jnp.abs(recon - r_ref)))
    assert jnp.allclose(masks, m_ref, atol=2e-3, rtol=2e-3), \
        float(jnp.max(jnp.abs(masks - m_ref)))

    # 2) Default path: f32 weights, bf16 MXU inputs, f32 accumulation.
    recon_d, masks_d = mlp_decoder_forward(
        encoder_output, pos_embed, layers,
        output_dim=output_dim, num_patches=num_patches)
    jax.block_until_ready((recon_d, masks_d))
    assert float(jnp.max(jnp.abs(recon_d - r_ref))) < 0.05 * scale
    assert float(jnp.max(jnp.abs(masks_d - m_ref))) < 0.05

    # 3) bf16 weights/activations path (halves DMA bytes, 2x MXU rate).
    bf16 = jnp.bfloat16
    enc_bf = encoder_output.astype(bf16)
    pos_bf = pos_embed.astype(bf16)
    layers_bf = [(w.astype(bf16), b.astype(bf16)) for (w, b) in layers]
    recon_bf, masks_bf = mlp_decoder_forward(
        enc_bf, pos_bf, layers_bf,
        output_dim=output_dim, num_patches=num_patches)
    jax.block_until_ready((recon_bf, masks_bf))
    assert float(jnp.max(jnp.abs(recon_bf.astype(jnp.float32) - r_ref))) < 0.05 * scale
    assert float(jnp.max(jnp.abs(masks_bf.astype(jnp.float32) - m_ref))) < 0.05

    print("KERNEL_OK")
</pallas_src>

<mosaic_0001>
module attributes {stable_mosaic.version = 11 : i64} {
  func.func @_decoder_kernel(%arg0: i32, %arg1: i32, %arg2: memref<1x4x128xf32, #tpu.memory_space<vmem>>, %arg3: memref<8x128xf32, #tpu.memory_space<vmem>>, %arg4: memref<128x128xf32, #tpu.memory_space<vmem>>, %arg5: memref<1x128xf32, #tpu.memory_space<vmem>>, %arg6: memref<128x128xf32, #tpu.memory_space<vmem>>, %arg7: memref<1x128xf32, #tpu.memory_space<vmem>>, %arg8: memref<128x32xf32, #tpu.memory_space<vmem>>, %arg9: memref<1x32xf32, #tpu.memory_space<vmem>>, %arg10: memref<1x8x31xf32, #tpu.memory_space<vmem>>, %arg11: memref<1x4x8xf32, #tpu.memory_space<vmem>>) attributes {dimension_semantics = [#tpu.dimension_semantics<parallel>, #tpu.dimension_semantics<parallel>], iteration_bounds = array<i64: 1, 2>, scalar_prefetch = 0 : i64, scratch_operands = 0 : i64, tpu.core_type = #tpu.core_type<tc>, window_params = [{transform_indices = @transform_0, window_bounds = array<i64: 1, 4, 128>}, {transform_indices = @transform_1, window_bounds = array<i64: 8, 128>}, {pipeline_mode = #tpu.pipeline_mode<synchronous>, transform_indices = @transform_2, window_bounds = array<i64: 128, 128>}, {pipeline_mode = #tpu.pipeline_mode<synchronous>, transform_indices = @transform_3, window_bounds = array<i64: 1, 128>}, {pipeline_mode = #tpu.pipeline_mode<synchronous>, transform_indices = @transform_4, window_bounds = array<i64: 128, 128>}, {pipeline_mode = #tpu.pipeline_mode<synchronous>, transform_indices = @transform_5, window_bounds = array<i64: 1, 128>}, {pipeline_mode = #tpu.pipeline_mode<synchronous>, transform_indices = @transform_6, window_bounds = array<i64: 128, 32>}, {pipeline_mode = #tpu.pipeline_mode<synchronous>, transform_indices = @transform_7, window_bounds = array<i64: 1, 32>}, {transform_indices = @transform_8, window_bounds = array<i64: 1, 8, 31>}, {transform_indices = @transform_9, window_bounds = array<i64: 1, 4, 8>}]} {
    %c0 = arith.constant 0 : index
    %c0_0 = arith.constant 0 : index
    %c0_1 = arith.constant 0 : index
    %0 = vector.load %arg2[%c0, %c0_0, %c0_1] : memref<1x4x128xf32, #tpu.memory_space<vmem>>, vector<1x4x128xf32>
    %1 = vector.shape_cast %0 : vector<1x4x128xf32> to vector<4x128xf32>
    %2 = vector.shape_cast %1 : vector<4x128xf32> to vector<4x1x128xf32>
    %c0_2 = arith.constant 0 : index
    %c0_3 = arith.constant 0 : index
    %3 = vector.load %arg3[%c0_2, %c0_3] : memref<8x128xf32, #tpu.memory_space<vmem>>, vector<8x128xf32>
    %4 = vector.shape_cast %3 : vector<8x128xf32> to vector<1x8x128xf32>
    %5 = vector.broadcast %2 : vector<4x1x128xf32> to vector<4x8x128xf32>
    %6 = vector.broadcast %4 : vector<1x8x128xf32> to vector<4x8x128xf32>
    %7 = arith.addf %5, %6 : vector<4x8x128xf32>
    %cst = arith.constant 0.000000e+00 : f32
    %8 = vector.broadcast %cst : f32 to vector<4x8x128xf32>
    %9 = arith.maximumf %7, %8 : vector<4x8x128xf32>
    %10 = vector.shape_cast %9 : vector<4x8x128xf32> to vector<32x128xf32>
    %c0_4 = arith.constant 0 : index
    %c0_5 = arith.constant 0 : index
    %11 = vector.load %arg4[%c0_4, %c0_5] : memref<128x128xf32, #tpu.memory_space<vmem>>, vector<128x128xf32>
    %cst_6 = arith.constant dense<0.000000e+00> : vector<32x128xf32>
    %12 = tpu.matmul %10, %11, %cst_6 {dimension_numbers = #tpu.dot_dimension_numbers<[1], [0], [0], [1], [0, 0, 1, 1], [], []>} : vector<32x128xf32>, vector<128x128xf32>, vector<32x128xf32> -> vector<32x128xf32>
    %c0_7 = arith.constant 0 : index
    %c0_8 = arith.constant 0 : index
    %13 = vector.load %arg5[%c0_7, %c0_8] : memref<1x128xf32, #tpu.memory_space<vmem>>, vector<1x128xf32>
    %14 = vector.broadcast %13 : vector<1x128xf32> to vector<32x128xf32>
    %15 = arith.addf %12, %14 : vector<32x128xf32>
    %cst_9 = arith.constant 0.000000e+00 : f32
    %16 = vector.broadcast %cst_9 : f32 to vector<32x128xf32>
    %17 = arith.maximumf %15, %16 : vector<32x128xf32>
    %c0_10 = arith.constant 0 : index
    %c0_11 = arith.constant 0 : index
    %18 = vector.load %arg6[%c0_10, %c0_11] : memref<128x128xf32, #tpu.memory_space<vmem>>, vector<128x128xf32>
    %cst_12 = arith.constant dense<0.000000e+00> : vector<32x128xf32>
    %19 = tpu.matmul %17, %18, %cst_12 {dimension_numbers = #tpu.dot_dimension_numbers<[1], [0], [0], [1], [0, 0, 1, 1], [], []>} : vector<32x128xf32>, vector<128x128xf32>, vector<32x128xf32> -> vector<32x128xf32>
    %c0_13 = arith.constant 0 : index
    %c0_14 = arith.constant 0 : index
    %20 = vector.load %arg7[%c0_13, %c0_14] : memref<1x128xf32, #tpu.memory_space<vmem>>, vector<1x128xf32>
    %21 = vector.broadcast %20 : vector<1x128xf32> to vector<32x128xf32>
    %22 = arith.addf %19, %21 : vector<32x128xf32>
    %cst_15 = arith.constant 0.000000e+00 : f32
    %23 = vector.broadcast %cst_15 : f32 to vector<32x128xf32>
    %24 = arith.maximumf %22, %23 : vector<32x128xf32>
    %c0_16 = arith.constant 0 : index
    %c0_17 = arith.constant 0 : index
    %25 = vector.load %arg8[%c0_16, %c0_17] : memref<128x32xf32, #tpu.memory_space<vmem>>, vector<128x32xf32>
    %cst_18 = arith.constant dense<0.000000e+00> : vector<32x32xf32>
    %26 = tpu.matmul %24, %25, %cst_18 {dimension_numbers = #tpu.dot_dimension_numbers<[1], [0], [0], [1], [0, 0, 1, 1], [], []>} : vector<32x128xf32>, vector<128x32xf32>, vector<32x32xf32> -> vector<32x32xf32>
    %c0_19 = arith.constant 0 : index
    %c0_20 = arith.constant 0 : index
    %27 = vector.load %arg9[%c0_19, %c0_20] : memref<1x32xf32, #tpu.memory_space<vmem>>, vector<1x32xf32>
    %28 = vector.broadcast %27 : vector<1x32xf32> to vector<32x32xf32>
    %29 = arith.addf %26, %28 : vector<32x32xf32>
    %30 = vector.shape_cast %29 : vector<32x32xf32> to vector<4x8x32xf32>
    %31 = vector.extract_strided_slice %30 {offsets = [0, 0, 0], sizes = [4, 8, 31], strides = [1, 1, 1]} : vector<4x8x32xf32> to vector<4x8x31xf32>
    %32 = vector.extract_strided_slice %30 {offsets = [0, 0, 31], sizes = [4, 8, 1], strides = [1, 1, 1]} : vector<4x8x32xf32> to vector<4x8x1xf32>
    %cst_21 = arith.constant dense<0xFF800000> : vector<8x1xf32>
    %33 = vector.multi_reduction <maximumf>, %32, %cst_21 [0] : vector<4x8x1xf32> to vector<8x1xf32>
    %34 = vector.shape_cast %33 : vector<8x1xf32> to vector<1x8x1xf32>
    %35 = vector.broadcast %34 : vector<1x8x1xf32> to vector<4x8x1xf32>
    %36 = arith.subf %32, %35 : vector<4x8x1xf32>
    %37 = math.exp %36 : vector<4x8x1xf32>
    %cst_22 = arith.constant dense<0.000000e+00> : vector<8x1xf32>
    %38 = vector.multi_reduction <add>, %37, %cst_22 [0] : vector<4x8x1xf32> to vector<8x1xf32>
    %39 = vector.shape_cast %38 : vector<8x1xf32> to vector<1x8x1xf32>
    %40 = tpu.reciprocal %39 {approx = true} : vector<1x8x1xf32> -> vector<1x8x1xf32>
    %41 = vector.broadcast %40 : vector<1x8x1xf32> to vector<4x8x1xf32>
    %42 = arith.mulf %37, %41 : vector<4x8x1xf32>
    %43 = vector.shape_cast %42 : vector<4x8x1xf32> to vector<4x8xf32>
    %c0_23 = arith.constant 0 : index
    %c0_24 = arith.constant 0 : index
    %c0_25 = arith.constant 0 : index
    %44 = vector.load %arg11[%c0_23, %c0_24, %c0_25] : memref<1x4x8xf32, #tpu.memory_space<vmem>>, vector<1x4x8xf32>
    %45 = vector.shape_cast %44 : vector<1x4x8xf32> to vector<4x8xf32>
    %46 = vector.shape_cast %43 : vector<4x8xf32> to vector<1x4x8xf32>
    tpu.vector_store %arg11[%c0_23, %c0_24, %c0_25], %46 {strides = array<i32>} : memref<1x4x8xf32, #tpu.memory_space<vmem>>, vector<1x4x8xf32>,
    %47 = vector.broadcast %42 : vector<4x8x1xf32> to vector<4x8x31xf32>
    %48 = arith.mulf %31, %47 : vector<4x8x31xf32>
    %cst_26 = arith.constant dense<0.000000e+00> : vector<8x31xf32>
    %49 = vector.multi_reduction <add>, %48, %cst_26 [0] : vector<4x8x31xf32> to vector<8x31xf32>
    %c0_27 = arith.constant 0 : index
    %c0_28 = arith.constant 0 : index
    %c0_29 = arith.constant 0 : index
    %50 = vector.load %arg10[%c0_27, %c0_28, %c0_29] : memref<1x8x31xf32, #tpu.memory_space<vmem>>, vector<1x8x31xf32>
    %51 = vector.shape_cast %50 : vector<1x8x31xf32> to vector<8x31xf32>
    %52 = vector.shape_cast %49 : vector<8x31xf32> to vector<1x8x31xf32>
    tpu.vector_store %arg10[%c0_27, %c0_28, %c0_29], %52 {strides = array<i32>} : memref<1x8x31xf32, #tpu.memory_space<vmem>>, vector<1x8x31xf32>,
    return
  }
  func.func @transform_0(%arg0: i32, %arg1: i32) -> (i32, i32, i32) {
    %c0_i32 = arith.constant 0 : i32
    %c0_i32_0 = arith.constant 0 : i32
    %c0_i32_1 = arith.constant 0 : i32
    return %arg1, %c0_i32, %c0_i32_0 : i32, i32, i32
  }
  func.func @transform_1(%arg0: i32, %arg1: i32) -> (i32, i32) {
    %c0_i32 = arith.constant 0 : i32
    %c0_i32_0 = arith.constant 0 : i32
    return %arg0, %c0_i32 : i32, i32
  }
  func.func @transform_2(%arg0: i32, %arg1: i32) -> (i32, i32) {
    %c0_i32 = arith.constant 0 : i32
    %c0_i32_0 = arith.constant 0 : i32
    %c0_i32_1 = arith.constant 0 : i32
    return %c0_i32, %c0_i32_0 : i32, i32
  }
  func.func @transform_3(%arg0: i32, %arg1: i32) -> (i32, i32) {
    %c0_i32 = arith.constant 0 : i32
    %c0_i32_0 = arith.constant 0 : i32
    %c0_i32_1 = arith.constant 0 : i32
    return %c0_i32, %c0_i32_0 : i32, i32
  }
  func.func @transform_4(%arg0: i32, %arg1: i32) -> (i32, i32) {
    %c0_i32 = arith.constant 0 : i32
    %c0_i32_0 = arith.constant 0 : i32
    %c0_i32_1 = arith.constant 0 : i32
    return %c0_i32, %c0_i32_0 : i32, i32
  }
  func.func @transform_5(%arg0: i32, %arg1: i32) -> (i32, i32) {
    %c0_i32 = arith.constant 0 : i32
    %c0_i32_0 = arith.constant 0 : i32
    %c0_i32_1 = arith.constant 0 : i32
    return %c0_i32, %c0_i32_0 : i32, i32
  }
  func.func @transform_6(%arg0: i32, %arg1: i32) -> (i32, i32) {
    %c0_i32 = arith.constant 0 : i32
    %c0_i32_0 = arith.constant 0 : i32
    %c0_i32_1 = arith.constant 0 : i32
    return %c0_i32, %c0_i32_0 : i32, i32
  }
  func.func @transform_7(%arg0: i32, %arg1: i32) -> (i32, i32) {
    %c0_i32 = arith.constant 0 : i32
    %c0_i32_0 = arith.constant 0 : i32
    %c0_i32_1 = arith.constant 0 : i32
    return %c0_i32, %c0_i32_0 : i32, i32
  }
  func.func @transform_8(%arg0: i32, %arg1: i32) -> (i32, i32, i32) {
    %c0_i32 = arith.constant 0 : i32
    %c0_i32_0 = arith.constant 0 : i32
    return %arg1, %arg0, %c0_i32 : i32, i32, i32
  }
  func.func @transform_9(%arg0: i32, %arg1: i32) -> (i32, i32, i32) {
    %c0_i32 = arith.constant 0 : i32
    %c0_i32_0 = arith.constant 0 : i32
    return %arg1, %c0_i32, %arg0 : i32, i32, i32
  }
}

</mosaic_0001>

<bundles_post_ra>
// kernel: mlp_decoder_forward.1
= control target key start
LH: loop header
LB: loop body
LE: loop exit
PB: predicated region body
PF: predicated region fallthrough
CT: control target
= control target key end

     0   :  { %s1798_s0 = inlined_call_operand.vmem [shape: f32[2,4,128], index: 0, kind: input, shape index: {}]   ;;  %s1799_s1 = inlined_call_operand.vmem [shape: f32[8,128], index: 1, kind: input, shape index: {}]   ;;  %s1800_s2 = inlined_call_operand.vmem [shape: f32[128,128], index: 2, kind: input, shape index: {}]   ;;  %s1801_s3 = inlined_call_operand.vmem [shape: f32[1,128], index: 3, kind: input, shape index: {}]   ;;  %s1802_s4 = inlined_call_operand.vmem [shape: f32[128,128], index: 4, kind: input, shape index: {}]   ;;  %s1803_s5 = inlined_call_operand.vmem [shape: f32[1,128], index: 5, kind: input, shape index: {}]   ;;  %s1804_s6 = inlined_call_operand.vmem [shape: f32[128,32], index: 6, kind: input, shape index: {}]   ;;  %s1805_s7 = inlined_call_operand.vmem [shape: f32[1,32], index: 7, kind: input, shape index: {}]   ;;  %s1806_s8 = inlined_call_operand.hbm [shape: f32[2,8,31], index: 8, kind: output, shape index: {0}]   ;;  %s1807_s9 = inlined_call_operand.hbm [shape: f32[2,4,8], index: 9, kind: output, shape index: {1}]  }
   0x1   :  { %1808 = sst [smem:[#allocation8_spill]] %s1798_s0 }
   0x2   :  { %1809 = sst [smem:[#allocation9_spill]] %s1799_s1 }
   0x3   :  { %1810 = sst [smem:[#allocation10_spill]] %s1800_s2 }
   0x4   :  { %15 = vsyncpa [#allocation3], 0 }
   0x5   :  { %17 = vsyncpa [#allocation3 + $0x1], 0 }
   0x6   :  { %18 = vsyncpa [#allocation5], 0 }
   0x7   :  { %20 = vsyncpa [#allocation5 + $0x1], 0  ;;  %s1462_s30 = smov 0   ;;  %s1464_s10 = smov 0  }
   0x8   :  { %s1466_s11 = smov 0   ;;  %s1468_s12 = smov 0  }
   0x9   :  { %s1470_s13 = smov 0   ;;  %s1472_s14 = smov 0  }
   0xa LB: > { %s1001_s15 = sadd.s32 4294967295, %s1406_s14   ;;  %s1002_s16 = sadd.s32 4294967294, %s1406_s14   ;;  %s1406_s14 = sphi %s1472_s14, %s26_s14   ;;  %s1402_s13 = sphi %s1470_s13, %s1822_s13   ;;  %s1398_s12 = sphi %s1468_s12, %s1821_s12   ;;  %s1394_s11 = sphi %s1466_s11, %s1820_s11   ;;  %s1390_s10 = sphi %s1464_s10, %s1819_s10   ;;  %s1386_s30 = sphi %s1462_s30, %s1818_s30  }
   0xb   : > { %s35_s17 = sadd.s32 1, %s1402_s13  ;;  %s225_s18 = sadd.s32 1, %s1394_s11 }
   0xc   : > { %p36_p0 = scmp.ge.s32.totalorder %s35_s17, 2  ;;  %p235_p1 = scmp.ne.s32.totalorder %s1394_s11, %s1390_s10 }
   0xd   : > { %p236_p2 = scmp.eq.s32.totalorder %s1001_s15, 1  ;;  %p241_p3 = scmp.ne.s32.totalorder %s1390_s10, %s1386_s30 }
   0xe   : > { %s1824_s17 = smov (%p36_p0, %s35_s17), 0  ;;  %p242_p5 = scmp.eq.s32.totalorder %s1002_s16, 1 }
   0xf   : > { %p1502_p4 = por %p236_p2, %p235_p1  ;;  %s220_s20 = ssub.s32 %s1402_s13, %s1824_s17 }
  0x10   : > { %p1006_p6 = scmp.ge.s32.totalorder %s1406_s14, 1  ;;  %p223_p7 = scmp.eq.s32.totalorder %s220_s20, 0 }
  0x11   : > { %p1509_p8 = por %p242_p5, %p241_p3  ;;  %p320_p9 = scmp.lt.s32.totalorder %s1406_s14, 3 }
  0x12   : > { %s1515_s22 = scalar_select %p223_p7, %s1394_s11, %s225_s18  }
  0x13   : > { %p321_p10 = pnand %p1006_p6, %p320_p9 }
  0x14   : > { %s1813_s2 = sld [smem:[#allocation10_spill]] (!%p321_p10)  ;;  %p364_p11 = scmp.lt.s32.totalorder (!%p321_p10), %s1398_s12, 1 }
  0x15   : > { %324 = sbr.rel (%p321_p10) target bundleno = 876 (0x36c), region = 52  ;;  %s1814_s0 = sld [smem:[#allocation8_spill]] (!%p321_p10) }
  0x16   : > { %s1815_s1 = sld [smem:[#allocation9_spill]] (!%p321_p10)  ;;  %s1709_s20 = sand.u32 (!%p321_p10), 1, %s1390_s10  }
  0x17   : > { %s1008_s23 = sshll.u32 (!%p321_p10), %s1709_s20, 2  ;;  %s1007_s25 = sshll.u32 (!%p321_p10), %s1709_s20, 3 }
  0x18   : > { %s1017_s26 = sshll.u32 (!%p321_p10), %s1398_s12, 6  ;;  %s857_s28 = scalar_lea.sflag (!%p321_p10), [#allocation5], %s1709_s20 }
  0x19   : > { %s1723_s15 = scalar_lea.hbm (!%p321_p10), %s1807_s9, %s1017_s26 }
  0x1a   : > { %v442_v0 = vld [vmem:[%s1813_s2 + $0x78] sm:$0xff]  ;;  %v441_v1 = vld [vmem:[%s1813_s2 + $0x70] sm:$0xff]  ;;  %v385_v2 = vlaneseq  ;;  %v1408_v3 = vmov 1966171168   ;;  %v440_v5 = vld [vmem:[%s1813_s2 + $0x68] sm:$0xff]  ;;  %s365_s29 = scalar_select %p364_p11, %s1398_s12, 1 }
  0x1b   : > { %1080 = vmatprep.subr.mxu0 %v442_v0  ;;  %v383_v4 = vunpack.c.l.s4 %v1408_v3  ;;  %v439_v8 = vld [vmem:[%s1813_s2 + $0x60] sm:$0xff]  ;;  %v554_v11 = vld [vmem:[%s1802_s4 + $0x78] sm:$0xff]  ;;  %v553_v14 = vld [vmem:[%s1802_s4 + $0x70] sm:$0xff]  ;;  %vm759_vm0 = vcmask 261368   ;;  %vm842_vm1 = vcmask 252928   ;;  %vm825_vm2 = vcmask 1041409  }
  0x1c   : > { %1081 = vmatpush3.msra.mxu0 %v442_v0  ;;  %v1529_v6 = vshrl.u32 %v385_v2, 7  ;;  %s1009_s18 = sshll.u32 %s365_s29, 2  ;;  %v438_v12 = vld [vmem:[%s1813_s2 + $0x58] sm:$0xff]  ;;  %1118 = vmatprep.subr.mxu1 %v554_v11  ;;  %v552_v16 = vld [vmem:[%s1802_s4 + $0x68] sm:$0xff]  ;;  %v437_v17 = vld [vmem:[%s1813_s2 + $0x50] sm:$0xff]  ;;  %vm827_vm3 = vcmask 1042434  }
  0x1d   : > { %1082 = vmatprep.subr.mxu0 %v441_v1  ;;  %v384_v7 = vunpack.c.0.s8 %v383_v4  ;;  %s367_s24 = scalar_lea.vmem %s1814_s0, %s1009_s18  ;;  %1119 = vmatpush3.msra.mxu1 %v554_v11  ;;  %v1559_v18 = vld [vmem:[%s1815_s1] sm:$0xff]  ;;  %v436_v20 = vld [vmem:[%s1813_s2 + $0x48] sm:$0xff]  ;;  %v550_v26 = vld [vmem:[%s1802_s4 + $0x58] sm:$0xff]  ;;  %vm829_vm4 = vcmask 1043459   ;;  %vm832_vm5 = vcmask 60416   ;;  %s1729_s18 = scalar_lea.vmem [#allocation2], %s1007_s25 }
  0x1e   : > { %1083 = vmatpush3.msra.mxu0 %v441_v1  ;;  %v1539_v10 = vsub.s32 0, %v1529_v6  ;;  %v1010_v13 = vld.sshfl [vmem:[%s367_s24] sm:$0x33 pattern:$0x75316420]  ;;  %1120 = vmatprep.subr.mxu1 %v553_v14  ;;  %v434_v27 = vld [vmem:[%s1813_s2 + $0x38] sm:$0xff] }
  0x1f   : > { %1084 = vmatprep.subr.mxu0 %v440_v5  ;;  %v387_v9 = vsub.s32 %v384_v7, %v1529_v6  ;;  %1121 = vmatpush3.msra.mxu1 %v553_v14  ;;  %v551_v21 = vld [vmem:[%s1802_s4 + $0x60] sm:$0xff]  ;;  %v381_v24 = vcombine.high %v1010_v13, %v1010_v13  ;;  %v549_v28 = vld [vmem:[%s1802_s4 + $0x50] sm:$0xff]  ;;  %v548_v31 = vld [vmem:[%s1802_s4 + $0x48] sm:$0xff]  ;;  %s363_s24 = scalar_lea.vmem [#allocation4], %s1008_s23  ;;  %s1410_s29 = smov [#allocation4]  }
  0x20   : > { %1085 = vmatpush3.msra.mxu0 %v440_v5  ;;  %1122 = vmatprep.subr.mxu1 %v552_v16  ;;  %v435_v23 = vld [vmem:[%s1813_s2 + $0x40] sm:$0xff]  ;;  %v433_v29 = vld [vmem:[%s1813_s2 + $0x30] sm:$0xff]  ;;  %v432_v32 = vld [vmem:[%s1813_s2 + $0x28] sm:$0xff]  ;;  %s885_s27 = sshll.u32 %s363_s24, 4  ;;  %s1304_s0 = sshll.u32 %s1410_s29, 4  ;;  %s1725_s27 = int_to_ptr.vmem [resolvable:$true] %s885_s27  ;;  %s1305_s0 = int_to_ptr.vmem [resolvable:$false] %s1304_s0 }
  0x21   : > { %1086 = vmatprep.subr.mxu0 %v439_v8  ;;  %v388_v15 = vrot.slane %v1010_v13, %v387_v9  ;;  %1123 = vmatpush3.msra.mxu1 %v552_v16  ;;  %v395_v30 = vrot.slane %v381_v24, %v387_v9  ;;  %v547_v34 = vld [vmem:[%s1802_s4 + $0x40] sm:$0xff]  ;;  %v546_v38 = vld [vmem:[%s1802_s4 + $0x38] sm:$0xff]  ;;  %v545_v41 = vld [vmem:[%s1802_s4 + $0x30] sm:$0xff]  ;;  %s1300_s26 = scalar_lea.vmem %s1725_s27, 64  ;;  %s1306_s16 = scalar_lea.vmem %s1305_s0, 128 }
  0x22   : > { %1087 = vmatpush3.msra.mxu0 %v439_v8  ;;  %1124 = vmatprep.subr.mxu1 %v551_v21  ;;  %v431_v35 = vld [vmem:[%s1813_s2 + $0x20] sm:$0xff]  ;;  %v430_v39 = vld [vmem:[%s1813_s2 + $0x18] sm:$0xff]  ;;  %v429_v42 = vld [vmem:[%s1813_s2 + $0x10] sm:$0xff]  ;;  %p1301_p12 = scmp.ne.s32.totalorder %s1725_s27, %s1300_s26  ;;  %p1307_p1 = scmp.lt.s32.totalorder %s1725_s27, %s1305_s0 }
  0x23   : > { %1088 = vmatprep.subr.mxu0 %v438_v12  ;;  %v402_v19 = vrot.slane %v388_v15, %v1539_v10  ;;  %1125 = vmatpush3.msra.mxu1 %v551_v21  ;;  %v396_v33 = vcombine.high %v388_v15, %v388_v15  ;;  %v406_v36 = vrot.slane %v395_v30, %v1539_v10  ;;  %v544_v45 = vld [vmem:[%s1802_s4 + $0x28] sm:$0xff]  ;;  %v543_v48 = vld [vmem:[%s1802_s4 + $0x20] sm:$0xff]  ;;  %v542_v54 = vld [vmem:[%s1802_s4 + $0x18] sm:$0xff]  ;;  %p1308_p2 = scmp.lt.s32.totalorder %s1306_s16, %s1300_s26 }
  0x24   : > { %1089 = vmatpush3.msra.mxu0 %v438_v12  ;;  %1126 = vmatprep.subr.mxu1 %v550_v26  ;;  %v397_v37 = vcombine.high %v395_v30, %v395_v30  ;;  %v428_v46 = vld [vmem:[%s1813_s2 + $0x8] sm:$0xff]  ;;  %v427_v49 = vld [vmem:[%s1813_s2] sm:$0xff]  ;;  %v541_v55 = vld [vmem:[%s1802_s4 + $0x10] sm:$0xff]  ;;  %p1302_p13 = pnand %p1301_p12, %p1502_p4 }
  0x25   : > { %1090 = vmatprep.subr.mxu0 %v437_v17  ;;  %v419_v22 = vadd.f32 %v402_v19, %v1559_v18  ;;  %1127 = vmatpush3.msra.mxu1 %v550_v26  ;;  %v410_v40 = vrot.slane %v396_v33, %v1539_v10  ;;  %v420_v43 = vadd.f32 %v406_v36, %v1559_v18  ;;  %v540_v56 = vld [vmem:[%s1802_s4 + $0x8] sm:$0xff]  ;;  %v539_v57 = vld [vmem:[%s1802_s4] sm:$0xff]  ;;  %v666_v58 = vld [vmem:[%s1804_s6 + $0x78] sm:$0xff]  ;;  %p1309_p3 = por %p1308_p2, %p1307_p1 }
  0x26   : > { %1091 = vmatpush3.msra.mxu0 %v437_v17  ;;  %1128 = vmatprep.subr.mxu1 %v549_v28  ;;  %v414_v44 = vrot.slane %v397_v37, %v1539_v10  ;;  %v665_v59 = vld [vmem:[%s1804_s6 + $0x70] sm:$0xff]  ;;  %v664_v60 = vld [vmem:[%s1804_s6 + $0x68] sm:$0xff]  ;;  %v663_v61 = vld [vmem:[%s1804_s6 + $0x60] sm:$0xff]  ;;  %p1303_p0 = pneg %p1302_p13 }
  0x27   : > { %1092 = vmatprep.subr.mxu0 %v436_v20  ;;  %v423_v25 = vmax.f32 %v419_v22, 0.0  ;;  %1129 = vmatpush3.msra.mxu1 %v549_v28  ;;  %v421_v47 = vadd.f32 %v410_v40, %v1559_v18  ;;  %v424_v50 = vmax.f32 %v420_v43, 0.0  ;;  %v662_v62 = vld [vmem:[%s1804_s6 + $0x58] sm:$0xff]  ;;  %v661_v63 = vld [vmem:[%s1804_s6 + $0x50] sm:$0xff]  ;;  %v660_v0 = vld [vmem:[%s1804_s6 + $0x48] sm:$0xff] }
  0x28   : > { %1093 = vmatpush3.msra.mxu0 %v436_v20  ;;  %1130 = vmatprep.subr.mxu1 %v548_v31  ;;  %v422_v51 = vadd.f32 %v414_v44, %v1559_v18  ;;  %v659_v1 = vld [vmem:[%s1804_s6 + $0x40] sm:$0xff]  ;;  %v658_v3 = vld [vmem:[%s1804_s6 + $0x38] sm:$0xff]  ;;  %v657_v4 = vld [vmem:[%s1804_s6 + $0x30] sm:$0xff]  ;;  %p1310_p5 = pnand %p1309_p3, %p1303_p0 }
  0x29   : > { %1094 = vmatprep.subr.mxu0 %v435_v23  ;;  %1112 = vmatprep.mubr.f32.mxu0 %v423_v25  ;;  %v425_v52 = vmax.f32 %v421_v47, 0.0  ;;  %v656_v5 = vld [vmem:[%s1804_s6 + $0x28] sm:$0xff]  ;;  %v655_v7 = vld [vmem:[%s1804_s6 + $0x20] sm:$0xff]  ;;  %v654_v21 = vld [vmem:[%s1804_s6 + $0x18] sm:$0xff] }
  0x2a   : > { %1095 = vmatpush3.msra.mxu0 %v435_v23  ;;  %1131 = vmatpush3.msra.mxu1 %v548_v31  ;;  %v426_v53 = vmax.f32 %v422_v51, 0.0  ;;  %v1011_v8 = vld [vmem:[%s1801_s3] ss:$0 sm:$0xff]  ;;  %v653_v22 = vld [vmem:[%s1804_s6 + $0x10] sm:$0xff]  ;;  %v652_v23 = vld [vmem:[%s1804_s6 + $0x8] sm:$0xff] }
  0x2b   : > { %1096 = vmatprep.subr.mxu0 %v434_v27  ;;  %1132 = vmatprep.subr.mxu1 %v547_v34  ;;  %v651_v24 = vld [vmem:[%s1804_s6] sm:$0xff] }
  0x2c   : > { %1097 = vmatpush3.msra.mxu0 %v434_v27  ;;  %1133 = vmatpush3.msra.mxu1 %v547_v34  ;;  %v1012_v25 = vld [vmem:[%s1803_s5] ss:$0 sm:$0xff] }
  0x2d   : > { %1098 = vmatprep.subr.mxu0 %v433_v29  ;;  %1134 = vmatprep.subr.mxu1 %v546_v38  ;;  %v1013_v40 = vld [vmem:[%s1805_s7] ss:$0 sm:$0xff] }
  0x2e   : > { %1099 = vmatpush3.msra.mxu0 %v433_v29  ;;  %1135 = vmatpush3.msra.mxu1 %v546_v38  ;;  %v1409_v38 = vmov 31  }
  0x2f   : > { %1100 = vmatprep.subr.mxu0 %v432_v32  ;;  %1136 = vmatprep.subr.mxu1 %v545_v41 }
  0x30   : > { %1101 = vmatpush3.msra.mxu0 %v432_v32  ;;  %1137 = vmatpush3.msra.mxu1 %v545_v41 }
  0x31   : > { %1102 = vmatprep.subr.mxu0 %v431_v35  ;;  %1138 = vmatprep.subr.mxu1 %v544_v45 }
  0x32   : > { %1103 = vmatpush3.msra.mxu0 %v431_v35  ;;  %1139 = vmatpush3.msra.mxu1 %v544_v45 }
  0x33   : > { %1104 = vmatprep.subr.mxu0 %v430_v39  ;;  %1140 = vmatprep.subr.mxu1 %v543_v48 }
  0x34   : > { %1105 = vmatpush3.msra.mxu0 %v430_v39  ;;  %1141 = vmatpush3.msra.mxu1 %v543_v48 }
  0x35   : > { %1106 = vmatprep.subr.mxu0 %v429_v42  ;;  %1142 = vmatprep.subr.mxu1 %v542_v54 }
  0x36   : > { %1107 = vmatpush3.msra.mxu0 %v429_v42  ;;  %1143 = vmatpush3.msra.mxu1 %v542_v54 }
  0x37   : > { %1108 = vmatprep.subr.mxu0 %v428_v46  ;;  %1144 = vmatprep.subr.mxu1 %v541_v55 }
  0x38   : > { %1109 = vmatpush3.msra.mxu0 %v428_v46  ;;  %1145 = vmatpush3.msra.mxu1 %v541_v55 }
  0x39   : > { %1110 = vmatprep.subr.mxu0 %v427_v49  ;;  %1146 = vmatprep.subr.mxu1 %v540_v56 }
  0x3a   : > { %1111 = vmatpush3.msra.mxu0 %v427_v49  ;;  %1147 = vmatpush3.msra.mxu1 %v540_v56 }
  0x3b   : > { %1113 = vmatmul.mubr.f32.vlgmr.msra.gmra.mxu0 %v424_v50  ;;  %1148 = vmatprep.subr.mxu1 %v539_v57 }
  0x3c   : > { %1115 = vmatprep.mubr.f32.mxu0 %v425_v52  ;;  %1149 = vmatpush3.msra.mxu1 %v539_v57 }
  0x3d   : > { %1156 = vmatprep.subr.mxu0 %v666_v58  ;;  %1194 = vmatprep.subr.mxu1 %v666_v58 }
  0x3e   : > { %1157 = vmatpush3.msra.mxu0 %v666_v58  ;;  %1289 = vset.pattern.permute.xlu1 %v1409_v38 }
  0x3f   : > { %1116 = vmatmul.mubr.f32.gmra.mxu0 %v426_v53  ;;  %1158 = vmatprep.subr.mxu0 %v665_v59 }
  0x40   : > { %1159 = vmatpush3.msra.mxu0 %v665_v59  ;;  %1288 = vset.pattern.permute.xlu0 %v1409_v38 }
  0x41   : > { %1160 = vmatprep.subr.mxu0 %v664_v60 }
  0x42   : > { %1161 = vmatpush3.msra.mxu0 %v664_v60 }
  0x43   : > { %1162 = vmatprep.subr.mxu0 %v663_v61 }
  0x44   : > { %1163 = vmatpush3.msra.mxu0 %v663_v61 }
  0x45   : > { %1164 = vmatprep.subr.mxu0 %v662_v62 }
  0x46   : > { %1165 = vmatpush3.msra.mxu0 %v662_v62 }
  0x47   : > { %1166 = vmatprep.subr.mxu0 %v661_v63 }
  0x48   : > { %1167 = vmatpush3.msra.mxu0 %v661_v63 }
  0x49   : > { %1168 = vmatprep.subr.mxu0 %v660_v0 }
  0x4a   : > { %1169 = vmatpush3.msra.mxu0 %v660_v0 }
  0x4b   : > { %1170 = vmatprep.subr.mxu0 %v659_v1 }
  0x4c   : > { %1171 = vmatpush3.msra.mxu0 %v659_v1 }
  0x4d   : > { %1172 = vmatprep.subr.mxu0 %v658_v3 }
  0x4e   : > { %1173 = vmatpush3.msra.mxu0 %v658_v3 }
  0x4f   : > { %1174 = vmatprep.subr.mxu0 %v657_v4 }
  0x50   : > { %1175 = vmatpush3.msra.mxu0 %v657_v4 }
  0x51   : > { %1176 = vmatprep.subr.mxu0 %v656_v5 }
  0x52   : > { %1177 = vmatpush3.msra.mxu0 %v656_v5 }
  0x53   : > { %1178 = vmatprep.subr.mxu0 %v655_v7 }
  0x54   : > { %1179 = vmatpush3.msra.mxu0 %v655_v7 }
  0x55   : > { %1180 = vmatprep.subr.mxu0 %v654_v21 }
  0x56   : > { %1181 = vmatpush3.msra.mxu0 %v654_v21 }
  0x57   : > { %1182 = vmatprep.subr.mxu0 %v653_v22 }
  0x58   : > { %1183 = vmatpush3.msra.mxu0 %v653_v22 }
  0x59   : > { %1184 = vmatprep.subr.mxu0 %v652_v23 }
  0x5a   : > { %1185 = vmatpush3.msra.mxu0 %v652_v23 }
  0x5b   : > { %1186 = vmatprep.subr.mxu0 %v651_v24 }
  0x5c   : > { %1187 = vmatpush3.msra.mxu0 %v651_v24 }
  0xfb   : > { %v1114_v9 = vpop.f32.mrf.mxu0 }
  0xfc   : > { %v522_v10 = vadd.f32 %v1114_v9, %v1011_v8 }
  0xfd   : > { %v516_v11 = vpop.f32.mrf.mxu0 }
  0xfe   : > { %v517_v12 = vadd.f32 %v1011_v8, %v516_v11  ;;  %v536_v15 = vmax.f32 %v522_v10, 0.0 }
  0xff   : > { %v1117_v13 = vpop.f32.mrf.mxu0 }
 0x100   : > { %v535_v14 = vmax.f32 %v517_v12, 0.0  ;;  %v532_v16 = vadd.f32 %v1117_v13, %v1011_v8 }
 0x101   : > { %v526_v17 = vpop.f32.mrf.mxu0 }
 0x102   : > { %v527_v18 = vadd.f32 %v1011_v8, %v526_v17  ;;  %1150 = vmatprep.mubr.f32.mxu1 %v535_v14  ;;  %v538_v20 = vmax.f32 %v532_v16, 0.0  ;;  %v808_v17 = vand.u32 127, %v385_v2 }
 0x103   : > { %1151 = vmatmul.mubr.f32.vlgmr.msra.gmra.mxu1 %v536_v15 }
 0x104   : > { %v537_v19 = vmax.f32 %v527_v18, 0.0  ;;  %1210 = vmatpush3.msra.mxu1 %v666_v58 }
 0x105   : > { %1195 = vmatprep.subr.mxu1 %v665_v59 }
 0x106   : > { %1153 = vmatprep.mubr.f32.mxu1 %v537_v19  ;;  %1211 = vmatpush3.msra.mxu1 %v665_v59 }
 0x107   : > { %1154 = vmatmul.mubr.f32.gmra.mxu1 %v538_v20  ;;  %1196 = vmatprep.subr.mxu1 %v664_v60  ;;  %v811_v20 = vsub.s32 %v808_v17, %v1529_v6 }
 0x108   : > { %1212 = vmatpush3.msra.mxu1 %v664_v60 }
 0x109   : > { %1197 = vmatprep.subr.mxu1 %v663_v61 }
 0x10a   : > { %1213 = vmatpush3.msra.mxu1 %v663_v61 }
 0x10b   : > { %1198 = vmatprep.subr.mxu1 %v662_v62 }
 0x10c   : > { %1214 = vmatpush3.msra.mxu1 %v662_v62 }
 0x10d   : > { %1199 = vmatprep.subr.mxu1 %v661_v63 }
 0x10e   : > { %1215 = vmatpush3.msra.mxu1 %v661_v63 }
 0x10f   : > { %1200 = vmatprep.subr.mxu1 %v660_v0 }
 0x110   : > { %1216 = vmatpush3.msra.mxu1 %v660_v0 }
 0x111   : > { %1201 = vmatprep.subr.mxu1 %v659_v1 }
 0x112   : > { %1217 = vmatpush3.msra.mxu1 %v659_v1 }
 0x113   : > { %1202 = vmatprep.subr.mxu1 %v658_v3 }
 0x114   : > { %1218 = vmatpush3.msra.mxu1 %v658_v3 }
 0x115   : > { %1203 = vmatprep.subr.mxu1 %v657_v4 }
 0x116   : > { %1219 = vmatpush3.msra.mxu1 %v657_v4 }
 0x117   : > { %1204 = vmatprep.subr.mxu1 %v656_v5 }
 0x118   : > { %1220 = vmatpush3.msra.mxu1 %v656_v5 }
 0x119   : > { %1205 = vmatprep.subr.mxu1 %v655_v7 }
 0x11a   : > { %1221 = vmatpush3.msra.mxu1 %v655_v7 }
 0x11b   : > { %1206 = vmatprep.subr.mxu1 %v654_v21 }
 0x11c   : > { %1222 = vmatpush3.msra.mxu1 %v654_v21 }
 0x11d   : > { %1207 = vmatprep.subr.mxu1 %v653_v22 }
 0x11e   : > { %1223 = vmatpush3.msra.mxu1 %v653_v22 }
 0x11f   : > { %1208 = vmatprep.subr.mxu1 %v652_v23 }
 0x120   : > { %1224 = vmatpush3.msra.mxu1 %v652_v23 }
 0x121   : > { %1209 = vmatprep.subr.mxu1 %v651_v24 }
 0x122   : > { %1225 = vmatpush3.msra.mxu1 %v651_v24 }
 0x1c3   : > { %v1152_v26 = vpop.f32.mrf.mxu1 }
 0x1c4   : > { %v634_v27 = vadd.f32 %v1152_v26, %v1012_v25 }
 0x1c5   : > { %v628_v28 = vpop.f32.mrf.mxu1 }
 0x1c6   : > { %v629_v29 = vadd.f32 %v1012_v25, %v628_v28  ;;  %v648_v32 = vmax.f32 %v634_v27, 0.0 }
 0x1c7   : > { %v1155_v30 = vpop.f32.mrf.mxu1 }
 0x1c8   : > { %v647_v31 = vmax.f32 %v629_v29, 0.0  ;;  %v644_v33 = vadd.f32 %v1155_v30, %v1012_v25 }
 0x1c9   : > { %v638_v34 = vpop.f32.mrf.mxu1 }
 0x1ca   : > { %v639_v35 = vadd.f32 %v1012_v25, %v638_v34  ;;  %1188 = vmatprep.mubr.f32.mxu0 %v647_v31  ;;  %v650_v37 = vmax.f32 %v644_v33, 0.0 }
 0x1cb   : > { %1189 = vmatmul.mubr.f32.vlgmr.msra.gmra.mxu0 %v648_v32 }
 0x1cc   : > { %v649_v36 = vmax.f32 %v639_v35, 0.0 }
 0x1ce   : > { %1191 = vmatprep.mubr.f32.mxu1 %v649_v36 }
 0x1cf   : > { %1192 = vmatmul.mubr.f32.vlgmr.msra.gmra.mxu1 %v650_v37 }
 0x28b   : > { %v1190_v39 = vpop.f32.mrf.mxu0 }
 0x28c   : > { %v746_v44 = vadd.f32 %v1190_v39, %v1013_v40 }
 0x28d   : > { %v740_v41 = vpop.f32.mrf.mxu0 }
 0x28e   : > { %v741_v42 = vadd.f32 %v1013_v40, %v740_v41  ;;  %v761_v49 = vsel %vm759_vm0, %v746_v44, -inf }
 0x28f   : > { %v1193_v43 = vpop.f32.mrf.mxu1 }
 0x290   : > { %v1695_v45 = vadd.f32 %v1193_v43, %v1013_v40  ;;  %v760_v47 = vsel %vm759_vm0, %v741_v42, -inf }
 0x291   : > { %v750_v46 = vpop.f32.mrf.mxu1  ;;  %v764_v52 = vmax.f32 %v760_v47, %v761_v49 }
 0x292   : > { %v751_v48 = vadd.f32 %v1013_v40, %v750_v46  ;;  %v763_v50 = vsel %vm759_vm0, %v1695_v45, -inf }
 0x294   : > { %v762_v51 = vsel %vm759_vm0, %v751_v48, -inf }
 0x295   : > { %v765_v53 = vmax.f32 %v762_v51, %v763_v50 }
 0x297   : > { %v766_v54 = vmax.f32 %v764_v52, %v765_v53 }
 0x299   : > { %v767_v55 = vsub.f32 %v741_v42, %v766_v54  ;;  %v768_v56 = vsub.f32 %v746_v44, %v766_v54  ;;  %v769_v57 = vsub.f32 %v751_v48, %v766_v54  ;;  %v770_v58 = vsub.f32 %v1695_v45, %v766_v54 }
 0x29b   : > { %v771_v59 = vmul.f32 1.442695, %v767_v55  ;;  %v773_v60 = vmul.f32 1.442695, %v768_v56  ;;  %v775_v61 = vmul.f32 1.442695, %v769_v57 }
 0x29c   : > { %v777_v62 = vmul.f32 1.442695, %v770_v58 }
 0x29d   : > { %1290 = vpow2.f32 %v771_v59 }
 0x29e   : > { %1292 = vpow2.f32 %v773_v60 }
 0x29f   : > { %1294 = vpow2.f32 %v775_v61 }
 0x2a0   : > { %1296 = vpow2.f32 %v777_v62 }
 0x2aa   : > { %v1291_v63 = vpop.eup %1290 }
 0x2ab   : > { %v1293_v0 = vpop.eup %1292  ;;  %v779_v1 = vsel %vm759_vm0, %v1291_v63, 0.0 }
 0x2ac   : > { %v1295_v3 = vpop.eup %1294  ;;  %v780_v4 = vsel %vm759_vm0, %v1293_v0, 0.0 }
 0x2ad   : > { %v1297_v5 = vpop.eup %1296  ;;  %v781_v7 = vadd.f32 %v780_v4, %v779_v1  ;;  %v782_v8 = vsel %vm759_vm0, %v1295_v3, 0.0 }
 0x2ae   : > { %v784_v10 = vsel %vm759_vm0, %v1297_v5, 0.0 }
 0x2af   : > { %v783_v9 = vadd.f32 %v782_v8, %v781_v7 }
 0x2b1   : > { %v785_v11 = vadd.f32 %v784_v10, %v783_v9 }
 0x2b3   : > { %1298 = vrcp.f32 %v785_v11 }
 0x2c0   : > { %v1299_v12 = vpop.eup %1298 }
 0x2c1   : > { %v789_v13 = vmul.f32 %v1299_v12, %v1295_v3  ;;  %v787_v14 = vmul.f32 %v1299_v12, %v1291_v63  ;;  %v790_v15 = vmul.f32 %v1299_v12, %v1297_v5  ;;  %v788_v16 = vmul.f32 %v1299_v12, %v1293_v0 }
 0x2c3   : > { %802 = vperm.xlu1 %1289, %v789_v13   ;;  %796 = vperm.xlu0 %1288, %v787_v14  }
 0x2c7   : > { %805 = vperm.xlu1 %1289, %v790_v15   ;;  %799 = vperm.xlu0 %1288, %v788_v16  }
 0x33e   : > { %v803_v18 = vpop.permute.xlu1 %802  ;;  %v797_v19 = vpop.permute.xlu0 %796 }
 0x33f   : > { %v838_v21 = vmul.f32 %v797_v19, %v741_v42  ;;  %v840_v24 = vmul.f32 %v803_v18, %v751_v48  ;;  %v812_v25 = vrot.slane %v797_v19, %v811_v20  ;;  %v820_v27 = vrot.slane %v803_v18, %v811_v20 }
 0x341   : > { %v843_v28 = vsel %vm842_vm1, %v838_v21, 0.0  ;;  %v846_v34 = vsel %vm842_vm1, %v840_v24, 0.0 }
 0x342   : > { %v806_v22 = vpop.permute.xlu1 %805  ;;  %v800_v23 = vpop.permute.xlu0 %799 }
 0x343   : > { %v816_v2 = vrot.slane %v800_v23, %v811_v20  ;;  %v839_v26 = vmul.f32 %v800_v23, %v746_v44  ;;  %v824_v6 = vrot.slane %v806_v22, %v811_v20  ;;  %v841_v29 = vmul.f32 %v806_v22, %v1695_v45 }
 0x345   : > { %v826_v30 = vsel %vm825_vm2, %v816_v2, %v812_v25  ;;  %v844_v31 = vsel %vm842_vm1, %v839_v26, 0.0  ;;  %v848_v37 = vsel %vm842_vm1, %v841_v29, 0.0 }
 0x346   : > { %v828_v32 = vsel %vm827_vm3, %v820_v27, %v826_v30  ;;  %v845_v33 = vadd.f32 %v844_v31, %v843_v28 }
 0x347   : > { %v830_v35 = vsel %vm829_vm4, %v824_v6, %v828_v32 }
 0x348   : > { %v847_v36 = vadd.f32 %v846_v34, %v845_v33  ;;  %833 = vst.msk [vmem:[%s363_s24] sm:$0xf] %vm832_vm5, %v830_v35 }
 0x349   : > { %1313 = shalt.err (!%p1310_p5)
}
 0x34a   : > { %s1314_s25 = scalar_lea.hbm %s1723_s15, 64  ;;  %s1318_s29 = scalar_lea.hbm %s1807_s9, 128 }
 0x34b   : > { %p1315_p6 = scmp.ne.s32.totalorder %s1723_s15, %s1314_s25  ;;  %p1319_p10 = scmp.lt.s32.totalorder %s1723_s15, %s1807_s9 }
 0x34c   : > { %p1320_p11 = scmp.lt.s32.totalorder %s1318_s29, %s1314_s25 }
 0x34d   : > { %p1316_p7 = pnand %p1315_p6, %p1502_p4 }
 0x34e   : > { %p1321_p12 = por %p1320_p11, %p1319_p10 }
 0x34f   : > { %p1317_p9 = pneg %p1316_p7 }
 0x351   : > { %p1322_p13 = pnand %p1321_p12, %p1317_p9 }
 0x353   : > { %1325 = shalt.err (!%p1322_p13)
}
 0x354   : > { %1227 = dma.vmem_to_hbm [thread:$0]  (%p1502_p4), %s1725_s27, 64, %s1723_s15, %s857_s28   ;;  %v849_v38 = vadd.f32 %v848_v37, %v847_v36 }
 0x355   : > { %s1816_s0 = sshll.u32 %s1398_s12, 7  ;;  %s1817_s2 = sshll.u32 %s1729_s18, 4  ;;  %s872_s2 = int_to_ptr.vmem [resolvable:$true] %s1817_s2 }
 0x356   : > { %s869_s1 = scalar_lea.hbm %s1806_s8, %s1816_s0  ;;  %850 = vst.msk [vmem:[%s1729_s18] sm:$0xff] %vm842_vm1, %v849_v38  ;;  %s852_s26 = scalar_lea.sflag [#allocation3], %s1709_s20 }
 0x357   : > { %s1326_s25 = scalar_lea.vmem %s872_s2, 128  ;;  %s1411_s24 = smov [#allocation2]  }
 0x358   : > { %p1327_p0 = scmp.ne.s32.totalorder %s872_s2, %s1326_s25  ;;  %s1330_s29 = sshll.u32 %s1411_s24, 4  ;;  %s1331_s29 = int_to_ptr.vmem [resolvable:$false] %s1330_s29 }
 0x359   : > { %s1332_s27 = scalar_lea.vmem %s1331_s29, 256  ;;  %p1333_p3 = scmp.lt.s32.totalorder %s872_s2, %s1331_s29 }
 0x35a   : > { %p1328_p1 = pnand %p1327_p0, %p1502_p4  ;;  %p1334_p5 = scmp.lt.s32.totalorder %s1332_s27, %s1326_s25 }
 0x35c   : > { %p1329_p2 = pneg %p1328_p1  ;;  %p1335_p6 = por %p1334_p5, %p1333_p3 }
 0x35e   : > { %p1336_p7 = pnand %p1335_p6, %p1329_p2 }
 0x360   : > { %1339 = shalt.err (!%p1336_p7)
}
 0x361   : > { %s1340_s12 = scalar_lea.hbm %s869_s1, 128  ;;  %s1344_s18 = scalar_lea.hbm %s1806_s8, 256 }
 0x362   : > { %p1341_p9 = scmp.ne.s32.totalorder %s869_s1, %s1340_s12  ;;  %p1345_p12 = scmp.lt.s32.totalorder %s869_s1, %s1806_s8 }
 0x363   : > { %p1346_p13 = scmp.lt.s32.totalorder %s1344_s18, %s1340_s12 }
 0x364   : > { %p1342_p10 = pnand %p1341_p9, %p1502_p4 }
 0x365   : > { %p1347_p0 = por %p1346_p13, %p1345_p12 }
 0x366   : > { %p1343_p11 = pneg %p1342_p10 }
 0x368   : > { %p1348_p1 = pnand %p1347_p0, %p1343_p11 }
 0x36a   : > { %1351 = shalt.err (!%p1348_p1)
}
 0x36b   : > { %1226 = dma.vmem_to_hbm [thread:$0]  (%p1502_p4), %s872_s2, 128, %s869_s1, %s852_s26  }
 0x36c PF: > { %p1237_p2 = scmp.ge.s32.totalorder %s1406_s14, 2  ;;  %s897_s16 = sand.u32 1, %s1386_s30  }
 0x36d   : > { %s898_s23 = scalar_lea.sflag [#allocation3], %s897_s16 }
 0x36e   : > { %p1231_p3 = pnand %p1237_p2, %p1509_p8 }
 0x370   : > { %p1232_p5 = pneg %p1231_p3 }
 0x372   : > { %1377 = dma.done.wait (%p1232_p5), %s898_s23, 128  }
 0x373   : > { %1379 = vsyncadd (%p1232_p5), %s898_s23, 4294967168  ;;  %s907_s25 = scalar_lea.sflag [#allocation5], %s897_s16 }
 0x374   : > { %1381 = dma.done.wait (%p1232_p5), %s907_s25, 64  }
 0x375   : > { %1383 = vsyncadd (%p1232_p5), %s907_s25, 4294967232  ;;  %s26_s14 = sadd.s32 1, %s1406_s14   ;;  %s1818_s30 = smov %s1390_s10 }
 0x376   : > { %p23_p6 = scmp.ge.s32.totalorder %s26_s14, 4   ;;  %s1819_s10 = smov %s1394_s11 }
 0x377   : > { %s1820_s11 = smov %s1515_s22  ;;  %s1821_s12 = smov %s1402_s13 }
 0x378   : > { %s1822_s13 = smov %s1824_s17  ;;  %25 = sbr.rel (!%p23_p6) target bundleno = 10 (0xa), region = 107 }
 0x37d   :  { %912 = vsyncpa [#allocation3], 1 }
 0x37e   :  { %914 = vsyncpa [#allocation3 + $0x1], 1 }
 0x37f   :  { %915 = vsyncpa [#allocation5], 1 }
 0x380   :  { %917 = vsyncpa [#allocation5 + $0x1], 1 }

</bundles_post_ra>
